<compile_context>
chip_gen: v5e
topology: v5e:2x2
jax: 0.10.0
libtpu: 0.0.40
codegen_flags: <defaults>
</compile_context>

<pallas_src>
import functools
import math

import jax
import jax.numpy as jnp
from jax.experimental import pallas as pl
from jax.experimental.pallas import tpu as pltpu


# ---------------------------------------------------------------------------
# Kernel 1: per-row-tile projection for ALL heads at once
#   Wh_all = X @ W_all            (W_all = [W_0 | W_1 | ...])
#   f      = Wh_all @ A_all       (A_all block-diag -> f[:, h] = Wh_h @ a1_h,
#                                  f[:, nheads+h] = Wh_h @ a2_h)
# ---------------------------------------------------------------------------
def _gat_project_kernel(x_ref, w_ref, a_ref, wh_ref, f_ref):
    wh = jnp.dot(x_ref[...], w_ref[...], preferred_element_type=jnp.float32)
    wh_ref[...] = wh.astype(wh_ref.dtype)          # bf16 storage for the MXU operand
    f_ref[...] = jnp.dot(wh, a_ref[...],
                         preferred_element_type=jnp.float32).astype(f_ref.dtype)


def _project(x, w_all, a_all, *, tm):
    n, in_f = x.shape
    f_tot = w_all.shape[1]
    ncols = a_all.shape[1]
    grid = (n // tm,)
    return pl.pallas_call(
        _gat_project_kernel,
        out_shape=(jax.ShapeDtypeStruct((n, f_tot), jnp.bfloat16),
                   jax.ShapeDtypeStruct((n, ncols), jnp.float32)),
        grid_spec=pltpu.PrefetchScalarGridSpec(
            num_scalar_prefetch=0,
            grid=grid,
            in_specs=[
                pl.BlockSpec((tm, in_f), lambda i: (i, 0)),
                pl.BlockSpec((in_f, f_tot), lambda i: (0, 0)),
                pl.BlockSpec((f_tot, ncols), lambda i: (0, 0)),
            ],
            out_specs=[
                pl.BlockSpec((tm, f_tot), lambda i: (i, 0)),
                pl.BlockSpec((tm, ncols), lambda i: (i, 0)),
            ],
        ),
        compiler_params=pltpu.CompilerParams(dimension_semantics=("parallel",)),
    )(x.astype(jnp.float32), w_all.astype(jnp.float32), a_all.astype(jnp.float32))


# ---------------------------------------------------------------------------
# Kernel 2: attention for ALL heads, row-tiled x column-tiled (online softmax)
#   per head: e = LeakyReLU(f1_i + f2_j); masked softmax over j; acc += p @ Wh
#   finalize: h' = ELU(acc / l)  (+ log_softmax for the final layer)
# ---------------------------------------------------------------------------
def _gat_attention_kernel(f1_ref, f2t_ref, adj_ref, wh_ref, o_ref,
                          m_ref, l_ref, acc_ref, *,
                          nheads, hid, alpha, apply_log_softmax):
    k = pl.program_id(1)

    @pl.when(k == 0)
    def _():
        m_ref[...] = jnp.full_like(m_ref, -jnp.inf)
        l_ref[...] = jnp.zeros_like(l_ref)
        acc_ref[...] = jnp.zeros_like(acc_ref)

    mask = adj_ref[...] > 0                           # int8 mask, no fp32 cast
    neg = jnp.float32(-9e15)

    for h in range(nheads):                           # static unroll over heads;
        e = f1_ref[h] + f2t_ref[h]                    # adj tile read only once
        e = jnp.where(e > 0.0, e, alpha * e)          # LeakyReLU(alpha)
        s = jnp.where(mask, e, neg)
        m_prev = m_ref[h]                             # (tm, 1)
        m_new = jnp.maximum(m_prev, jnp.max(s, axis=-1, keepdims=True))
        scale = jnp.exp(m_prev - m_new)
        p = jnp.exp(s - m_new)                        # (tm, tk)
        l_ref[h] = scale * l_ref[h] + jnp.sum(p, axis=-1, keepdims=True)
        wh_h = wh_ref[:, h * hid:(h + 1) * hid]       # (tk, hid) bf16
        acc_ref[h] = scale * acc_ref[h] + jnp.dot(
            p.astype(jnp.bfloat16), wh_h, preferred_element_type=jnp.float32)
        m_ref[h] = m_new

    @pl.when(k == pl.num_programs(1) - 1)
    def _():
        outs = []
        for h in range(nheads):
            inv = pl.reciprocal(l_ref[h], approx=True)    # deferred softmax divide
            hh = acc_ref[h] * inv
            # ELU (heads use concat=True; the output layer gets ELU from GAT.forward)
            hh = jnp.where(hh > 0.0, hh, jnp.exp(jnp.minimum(hh, 0.0)) - 1.0)
            outs.append(hh)
        out = outs[0] if nheads == 1 else jnp.concatenate(outs, axis=-1)
        if apply_log_softmax:                              # fused final log_softmax(dim=1)
            mx = jnp.max(out, axis=-1, keepdims=True)
            z = out - mx
            out = z - jnp.log(jnp.sum(jnp.exp(z), axis=-1, keepdims=True))
        o_ref[...] = out.astype(o_ref.dtype)               # single lane-dense store


def _attention(f1, f2t, adj_i8, wh, *, nheads, hid, alpha, apply_log_softmax, tm, tk):
    n_pad = adj_i8.shape[0]
    f_tot = nheads * hid
    grid = (n_pad // tm, n_pad // tk)

    kernel = functools.partial(
        _gat_attention_kernel, nheads=nheads, hid=hid, alpha=alpha,
        apply_log_softmax=apply_log_softmax)

    cost = pl.CostEstimate(
        flops=int(2 * n_pad * n_pad * f_tot + 12 * n_pad * n_pad * nheads),
        transcendentals=int(n_pad * n_pad * nheads),
        bytes_accessed=int(n_pad * n_pad                         # int8 adj, once
                           + (n_pad // tm) * n_pad * f_tot * 2   # Wh restream (bf16)
                           + n_pad * f_tot * 4),                 # output
    )

    return pl.pallas_call(
        kernel,
        out_shape=jax.ShapeDtypeStruct((n_pad, f_tot), jnp.float32),
        grid_spec=pltpu.PrefetchScalarGridSpec(
            num_scalar_prefetch=0,
            grid=grid,
            in_specs=[
                pl.BlockSpec((nheads, tm, 1), lambda i, k: (0, i, 0)),   # f1 (per head)
                pl.BlockSpec((nheads, 1, tk), lambda i, k: (0, 0, k)),   # f2^T (per head)
                pl.BlockSpec((tm, tk), lambda i, k: (i, k)),             # adj tile (int8)
                pl.BlockSpec((tk, f_tot), lambda i, k: (k, 0)),          # Wh tile (bf16)
            ],
            out_specs=pl.BlockSpec((tm, f_tot), lambda i, k: (i, 0)),
            scratch_shapes=[
                pltpu.VMEM((nheads, tm, 1), jnp.float32),    # running max
                pltpu.VMEM((nheads, tm, 1), jnp.float32),    # running denom
                pltpu.VMEM((nheads, tm, hid), jnp.float32),  # running accumulator
            ],
        ),
        compiler_params=pltpu.CompilerParams(
            dimension_semantics=("parallel", "arbitrary"),   # rows shard on v7x megacore
            vmem_limit_bytes=40 * 1024 * 1024,
        ),
        cost_estimate=cost,
    )(f1, f2t, adj_i8, wh)


# ---------------------------------------------------------------------------
# One GAT layer (all heads merged, or the single-"head" output layer)
# ---------------------------------------------------------------------------
def _gat_layer(x, adj_i8, w_all, a_all, *, nheads, hid, alpha, tm, tk,
               apply_log_softmax):
    n_pad = x.shape[0]
    wh, f = _project(x, w_all, a_all, tm=tm)
    f1 = jnp.transpose(f[:, :nheads]).reshape(nheads, n_pad, 1)     # tiny XLA transpose
    f2t = jnp.transpose(f[:, nheads:]).reshape(nheads, 1, n_pad)
    return _attention(f1, f2t, adj_i8, wh, nheads=nheads, hid=hid, alpha=alpha,
                      apply_log_softmax=apply_log_softmax, tm=tm, tk=tk)


def _round_up(x, m):
    return (x + m - 1) // m * m


def _largest_divisor_tile(n, target, step):
    """Largest multiple of `step` dividing n and <= target (assumes step | n)."""
    t = (min(target, n) // step) * step
    while t > step and n % t != 0:
        t -= step
    return max(t, step)


# ---------------------------------------------------------------------------
# GAT.forward (inference)
# ---------------------------------------------------------------------------
def gat_forward(x, adj, head_weights, head_attn, out_w, out_a, *, alpha):
    n = x.shape[0]
    nheads = len(head_weights)
    hid = head_weights[0].shape[1]
    out_c = out_w.shape[1]

    # Tiling: node axis padded to a multiple of 128; tm multiple of 32 (int8
    # sublanes) with >= 2 row steps so the "parallel" axis spans both v7x TCs;
    # tk multiple of 128 lanes for the int8 adj stream.
    n_pad = _round_up(n, 128)
    tm_cap = 256 if n_pad > 256 else max(32, n_pad // 2)
    tm = _largest_divisor_tile(n_pad, tm_cap, 32)
    tk = _largest_divisor_tile(n_pad, 512, 128)

    pad_r = n_pad - n
    x_p = jnp.pad(x.astype(jnp.float32), ((0, pad_r), (0, 0)))
    # adj only provides the >0 neighbourhood mask -> stream it as int8 {0,1}.
    adj_i8 = jnp.pad((adj > 0).astype(jnp.int8), ((0, pad_r), (0, pad_r)))

    # Merge all first-layer heads: stacked W and block-diagonal attention vectors.
    w_all = jnp.concatenate(head_weights, axis=1)               # (in_f, nheads*hid)
    a1 = jnp.zeros((nheads * hid, nheads), jnp.float32)
    a2 = jnp.zeros((nheads * hid, nheads), jnp.float32)
    for h, a in enumerate(head_attn):
        a1 = a1.at[h * hid:(h + 1) * hid, h].set(a[:hid, 0])
        a2 = a2.at[h * hid:(h + 1) * hid, h].set(a[hid:, 0])
    a_all = jnp.concatenate([a1, a2], axis=1)                   # (nheads*hid, 2*nheads)

    h_cat = _gat_layer(x_p, adj_i8, w_all, a_all, nheads=nheads, hid=hid,
                       alpha=alpha, tm=tm, tk=tk, apply_log_softmax=False)

    # Output layer (concat=False) + fused ELU + log_softmax.
    a_out = jnp.concatenate([out_a[:out_c, :], out_a[out_c:, :]], axis=1)  # (out_c, 2)
    out = _gat_layer(h_cat, adj_i8, out_w, a_out, nheads=1, hid=out_c,
                     alpha=alpha, tm=tm, tk=tk, apply_log_softmax=True)
    return out[:n]


if __name__ == "__main__":
    # Small deterministic example consistent with the module.
    N, IN_F, HID, OUT_C, NHEADS = 128, 64, 32, 16, 2
    ALPHA = 0.2

    key = jax.random.PRNGKey(0)
    keys = jax.random.split(key, 2 + 2 * (NHEADS + 1))
    kx, kadj = keys[0], keys[1]
    kparams = iter(keys[2:])

    x = jax.random.normal(kx, (N, IN_F), dtype=jnp.float32)
    adj = (jax.random.uniform(kadj, (N, N)) < 0.1).astype(jnp.float32)
    adj = jnp.maximum(adj, jnp.eye(N, dtype=jnp.float32))   # self-loops

    def xavier(k, shape):
        gain = 1.414
        bound = gain * math.sqrt(6.0 / (shape[0] + shape[1]))
        return jax.random.uniform(k, shape, minval=-bound, maxval=bound,
                                  dtype=jnp.float32)

    head_ws, head_as = [], []
    for _ in range(NHEADS):
        head_ws.append(xavier(next(kparams), (IN_F, HID)))
        head_as.append(xavier(next(kparams), (2 * HID, 1)))
    out_w = xavier(next(kparams), (HID * NHEADS, OUT_C))
    out_a = xavier(next(kparams), (2 * OUT_C, 1))

    out = gat_forward(x, adj, head_ws, head_as, out_w, out_a, alpha=ALPHA)
    jax.block_until_ready(out)

    # Pure-JAX reference (eval-mode semantics of the PyTorch module).
    HI = jax.lax.Precision.HIGHEST

    def ref_layer(h, adj, w, a, concat):
        wh = jnp.dot(h, w, precision=HI)
        of = w.shape[1]
        e = jnp.dot(wh, a[:of, :], precision=HI) + jnp.dot(wh, a[of:, :], precision=HI).T
        e = jnp.where(e > 0, e, ALPHA * e)
        att = jnp.where(adj > 0, e, -9e15)
        att = jax.nn.softmax(att, axis=1)
        hp = jnp.dot(att, wh, precision=HI)
        return jax.nn.elu(hp) if concat else hp

    hcat = jnp.concatenate([ref_layer(x, adj, w, a, True)
                            for w, a in zip(head_ws, head_as)], axis=1)
    ref = jax.nn.log_softmax(jax.nn.elu(ref_layer(hcat, adj, out_w, out_a, False)),
                             axis=1)

    assert out.shape == (N, OUT_C)
    err = float(jnp.max(jnp.abs(out - ref)))
    # bf16 MXU operands (p, Wh) + approx reciprocal -> bf16-level tolerance.
    assert jnp.allclose(out, ref, atol=5e-2, rtol=5e-2), f"max abs err {err}"

    print("KERNEL_OK")
</pallas_src>

<mosaic_0001>
module attributes {stable_mosaic.version = 11 : i64} {
  func.func @_gat_project_kernel(%arg0: i32, %arg1: memref<64x64xf32, #tpu.memory_space<vmem>>, %arg2: memref<64x64xf32, #tpu.memory_space<vmem>>, %arg3: memref<64x4xf32, #tpu.memory_space<vmem>>, %arg4: memref<64x64xbf16, #tpu.memory_space<vmem>>, %arg5: memref<64x4xf32, #tpu.memory_space<vmem>>) attributes {dimension_semantics = [#tpu.dimension_semantics<parallel>], iteration_bounds = array<i64: 2>, scalar_prefetch = 0 : i64, scratch_operands = 0 : i64, tpu.core_type = #tpu.core_type<tc>, window_params = [{transform_indices = @transform_0, window_bounds = array<i64: 64, 64>}, {pipeline_mode = #tpu.pipeline_mode<synchronous>, transform_indices = @transform_1, window_bounds = array<i64: 64, 64>}, {pipeline_mode = #tpu.pipeline_mode<synchronous>, transform_indices = @transform_2, window_bounds = array<i64: 64, 4>}, {transform_indices = @transform_3, window_bounds = array<i64: 64, 64>}, {transform_indices = @transform_4, window_bounds = array<i64: 64, 4>}]} {
    %c0 = arith.constant 0 : index
    %c0_0 = arith.constant 0 : index
    %0 = vector.load %arg1[%c0, %c0_0] : memref<64x64xf32, #tpu.memory_space<vmem>>, vector<64x64xf32>
    %c0_1 = arith.constant 0 : index
    %c0_2 = arith.constant 0 : index
    %1 = vector.load %arg2[%c0_1, %c0_2] : memref<64x64xf32, #tpu.memory_space<vmem>>, vector<64x64xf32>
    %cst = arith.constant dense<0.000000e+00> : vector<64x64xf32>
    %2 = tpu.matmul %0, %1, %cst {dimension_numbers = #tpu.dot_dimension_numbers<[1], [0], [0], [1], [0, 0, 1, 1], [], []>} : vector<64x64xf32>, vector<64x64xf32>, vector<64x64xf32> -> vector<64x64xf32>
    %3 = arith.truncf %2 : vector<64x64xf32> to vector<64x64xbf16>
    %c0_3 = arith.constant 0 : index
    %c0_4 = arith.constant 0 : index
    %4 = vector.load %arg4[%c0_3, %c0_4] : memref<64x64xbf16, #tpu.memory_space<vmem>>, vector<64x64xbf16>
    tpu.vector_store %arg4[%c0_3, %c0_4], %3 {strides = array<i32>} : memref<64x64xbf16, #tpu.memory_space<vmem>>, vector<64x64xbf16>,
    %c0_5 = arith.constant 0 : index
    %c0_6 = arith.constant 0 : index
    %5 = vector.load %arg3[%c0_5, %c0_6] : memref<64x4xf32, #tpu.memory_space<vmem>>, vector<64x4xf32>
    %cst_7 = arith.constant dense<0.000000e+00> : vector<64x4xf32>
    %6 = tpu.matmul %2, %5, %cst_7 {dimension_numbers = #tpu.dot_dimension_numbers<[1], [0], [0], [1], [0, 0, 1, 1], [], []>} : vector<64x64xf32>, vector<64x4xf32>, vector<64x4xf32> -> vector<64x4xf32>
    %c0_8 = arith.constant 0 : index
    %c0_9 = arith.constant 0 : index
    %7 = vector.load %arg5[%c0_8, %c0_9] : memref<64x4xf32, #tpu.memory_space<vmem>>, vector<64x4xf32>
    tpu.vector_store %arg5[%c0_8, %c0_9], %6 {strides = array<i32>} : memref<64x4xf32, #tpu.memory_space<vmem>>, vector<64x4xf32>,
    return
  }
  func.func @transform_0(%arg0: i32) -> (i32, i32) {
    %c0_i32 = arith.constant 0 : i32
    %c0_i32_0 = arith.constant 0 : i32
    return %arg0, %c0_i32 : i32, i32
  }
  func.func @transform_1(%arg0: i32) -> (i32, i32) {
    %c0_i32 = arith.constant 0 : i32
    %c0_i32_0 = arith.constant 0 : i32
    %c0_i32_1 = arith.constant 0 : i32
    return %c0_i32, %c0_i32_0 : i32, i32
  }
  func.func @transform_2(%arg0: i32) -> (i32, i32) {
    %c0_i32 = arith.constant 0 : i32
    %c0_i32_0 = arith.constant 0 : i32
    %c0_i32_1 = arith.constant 0 : i32
    return %c0_i32, %c0_i32_0 : i32, i32
  }
  func.func @transform_3(%arg0: i32) -> (i32, i32) {
    %c0_i32 = arith.constant 0 : i32
    %c0_i32_0 = arith.constant 0 : i32
    return %arg0, %c0_i32 : i32, i32
  }
  func.func @transform_4(%arg0: i32) -> (i32, i32) {
    %c0_i32 = arith.constant 0 : i32
    %c0_i32_0 = arith.constant 0 : i32
    return %arg0, %c0_i32 : i32, i32
  }
}

</mosaic_0001>

<bundles_post_ra>
// kernel: tpu_custom_call.1
= control target key start
LH: loop header
LB: loop body
LE: loop exit
PB: predicated region body
PF: predicated region fallthrough
CT: control target
= control target key end

     0   :  { %s572_s15 = smov 0   ;;  %s690_s0 = inlined_call_operand.vmem [shape: f32[128,64], index: 0, kind: input, shape index: {}]   ;;  %s691_s1 = inlined_call_operand.vmem [shape: f32[64,64], index: 1, kind: input, shape index: {}]   ;;  %s692_s2 = inlined_call_operand.vmem [shape: f32[64,4], index: 2, kind: input, shape index: {}]   ;;  %s693_s3 = inlined_call_operand.vmem [shape: bf16[128,64], index: 3, kind: output, shape index: {0}]   ;;  %s694_s4 = inlined_call_operand.vmem [shape: f32[128,4], index: 4, kind: output, shape index: {1}]  }
   0x1 LB: > { %s486_s16 = sadd.s32 4294967295, %s545_s15   ;;  %p490_p0 = scmp.ge.s32.totalorder %s545_s15, 1  ;;  %s545_s15 = sphi %s572_s15, %s15_s15  }
   0x2   : > { %p166_p1 = scmp.lt.s32.totalorder %s545_s15, 3 }
   0x4   : > { %p167_p2 = pnand %p490_p0, %p166_p1 }
   0x5   : > { %s491_s21 = sshll.u32 (!%p167_p2), %s486_s16, 3 }
   0x6   : > { %170 = sbr.rel (%p167_p2) target bundleno = 316 (0x13c), region = 32  ;;  %p198_p3 = scmp.lt.s32.totalorder (!%p167_p2), %s491_s21, 15 }
   0xb   : > { %v230_v0 = vld [vmem:[%s691_s1 + $0x38] sm:$0xff]  ;;  %v229_v1 = vld [vmem:[%s691_s1 + $0x30] sm:$0xff]  ;;  %v228_v2 = vld [vmem:[%s691_s1 + $0x28] sm:$0xff]  ;;  %s696_s21 = smov (!%p198_p3, %s491_s21), 15  ;;  %vm231_vm0 = vcmask 523264   ;;  %vm305_vm1 = vcmask 519168  }
   0xc   : > { %515 = vmatpush.msra.mxu2 %v230_v0  ;;  %264 = vmatpush.msra.mxu0 %v230_v0  ;;  %v227_v3 = vld [vmem:[%s691_s1 + $0x20] sm:$0xff]  ;;  %v226_v4 = vld [vmem:[%s691_s1 + $0x18] sm:$0xff]  ;;  %s492_s28 = sshll.u32 %s696_s21, 3  ;;  %v225_v5 = vld [vmem:[%s691_s1 + $0x10] sm:$0xff]  ;;  %s494_s5 = sshll.u32 %s696_s21, 2  ;;  %vm387_vm2 = vcmask 31744  }
   0xd   : > { %v321_v6 = vld [vmem:[%s692_s2 + $0x38] sm:$0xff]  ;;  %v224_v7 = vld [vmem:[%s691_s1 + $0x8] sm:$0xff]  ;;  %s612_s11 = scalar_lea.vmem %s690_s0, %s492_s28  ;;  %v320_v8 = vld [vmem:[%s692_s2 + $0x30] sm:$0xff]  ;;  %s207_s8 = scalar_lea.vmem %s693_s3, %s494_s5 }
   0xe   : > { %516 = vmatpush.msra.mxu2 %v229_v1  ;;  %265 = vmatpush.msra.mxu0 %v229_v1  ;;  %v319_v9 = vld [vmem:[%s692_s2 + $0x28] sm:$0xff]  ;;  %v223_v10 = vld [vmem:[%s691_s1] sm:$0xff]  ;;  %v317_v14 = vld [vmem:[%s692_s2 + $0x18] sm:$0xff] }
   0xf   : > { %523 = vmatpush.msra.mxu3 %v321_v6  ;;  %354 = vmatpush.msra.mxu1 %v321_v6  ;;  %v219_v11 = vld [vmem:[%s612_s11 + $0x20] sm:$0xff]  ;;  %v316_v15 = vld [vmem:[%s692_s2 + $0x10] sm:$0xff]  ;;  %v315_v16 = vld [vmem:[%s692_s2 + $0x8] sm:$0xff] }
  0x10   : > { %517 = vmatpush.msra.mxu2 %v228_v2  ;;  %266 = vmatpush.msra.mxu0 %v228_v2  ;;  %v215_v12 = vld [vmem:[%s612_s11] sm:$0xff]  ;;  %v220_v17 = vld [vmem:[%s612_s11 + $0x28] sm:$0xff]  ;;  %v221_v19 = vld [vmem:[%s612_s11 + $0x30] sm:$0xff] }
  0x11   : > { %524 = vmatpush.msra.mxu3 %v320_v8  ;;  %355 = vmatpush.msra.mxu1 %v320_v8  ;;  %v318_v13 = vld [vmem:[%s692_s2 + $0x20] sm:$0xff]  ;;  %v216_v18 = vld [vmem:[%s612_s11 + $0x8] sm:$0xff]  ;;  %v217_v20 = vld [vmem:[%s612_s11 + $0x10] sm:$0xff] }
  0x12   : > { %518 = vmatpush.msra.mxu2 %v227_v3  ;;  %267 = vmatpush.msra.mxu0 %v227_v3  ;;  %v222_v21 = vld [vmem:[%s612_s11 + $0x38] sm:$0xff]  ;;  %v314_v23 = vld [vmem:[%s692_s2] sm:$0xff] }
  0x13   : > { %525 = vmatpush.msra.mxu3 %v319_v9  ;;  %356 = vmatpush.msra.mxu1 %v319_v9  ;;  %v218_v22 = vld [vmem:[%s612_s11 + $0x18] sm:$0xff]  ;;  %s213_s11 = scalar_lea.vmem %s694_s4, %s492_s28 }
  0x14   : > { %519 = vmatpush.msra.mxu2 %v226_v4  ;;  %268 = vmatpush.msra.mxu0 %v226_v4 }
  0x15   : > { %526 = vmatpush.msra.mxu3 %v318_v13  ;;  %357 = vmatpush.msra.mxu1 %v318_v13 }
  0x16   : > { %520 = vmatpush.msra.mxu2 %v225_v5  ;;  %269 = vmatpush.msra.mxu0 %v225_v5 }
  0x17   : > { %527 = vmatpush.msra.mxu3 %v317_v14  ;;  %358 = vmatpush.msra.mxu1 %v317_v14 }
  0x18   : > { %521 = vmatpush.msra.mxu2 %v224_v7  ;;  %270 = vmatpush.msra.mxu0 %v224_v7 }
  0x19   : > { %528 = vmatpush.msra.mxu3 %v316_v15  ;;  %359 = vmatpush.msra.mxu1 %v316_v15 }
  0x1a   : > { %522 = vmatpush.msra.mxu2 %v223_v10  ;;  %271 = vmatpush.msra.mxu0 %v223_v10 }
  0x1b   : > { %501 = vmatmul.msk.f32.vlgmr.msra.gmra.mxu2 %vm231_vm0, %v219_v11  ;;  %497 = vmatmul.msk.f32.vlgmr.msra.gmra.mxu0 %vm231_vm0, %v215_v12 }
  0x1c   : > { %529 = vmatpush.msra.mxu3 %v315_v16  ;;  %360 = vmatpush.msra.mxu1 %v315_v16 }
  0x1e   : > { %530 = vmatpush.msra.mxu3 %v314_v23  ;;  %361 = vmatpush.msra.mxu1 %v314_v23 }
  0x23   : > { %502 = vmatmul.msk.f32.gmra.mxu2 %vm231_vm0, %v220_v17  ;;  %498 = vmatmul.msk.f32.gmra.mxu0 %vm231_vm0, %v216_v18 }
  0x2b   : > { %503 = vmatmul.msk.f32.gmra.mxu2 %vm231_vm0, %v221_v19  ;;  %499 = vmatmul.msk.f32.gmra.mxu0 %vm231_vm0, %v217_v20 }
  0x33   : > { %504 = vmatmul.msk.f32.gmra.mxu2 %vm231_vm0, %v222_v21  ;;  %500 = vmatmul.msk.f32.gmra.mxu0 %vm231_vm0, %v218_v22 }
  0x98   : > { %v273_v24 = vpop.f32.mrf.mxu0 }
  0x99   : > { %v297_v25 = vpack.c.bf16 %v273_v24, %v273_v24  ;;  %505 = vmatmul.msk.f32.vlgmr.msra.gmra.mxu1 %vm231_vm0, %v273_v24 }
  0x9b   : > { %306 = vst.msk [vmem:[%s207_s8] sm:$0xf] %vm305_vm1, %v297_v25 }
  0x9e   : > { %v285_v26 = vpop.f32.mrf.mxu2 }
  0x9f   : > { %v301_v27 = vpack.c.bf16 %v285_v26, %v285_v26  ;;  %509 = vmatmul.msk.f32.vlgmr.msra.gmra.mxu3 %vm231_vm0, %v285_v26 }
  0xa0   : > { %v276_v28 = vpop.f32.mrf.mxu0 }
  0xa1   : > { %310 = vst.msk [vmem:[%s207_s8 + $0x10] sm:$0xf] %vm305_vm1, %v301_v27  ;;  %v298_v29 = vpack.c.bf16 %v276_v28, %v276_v28  ;;  %506 = vmatmul.msk.f32.gmra.mxu1 %vm231_vm0, %v276_v28 }
  0xa3   : > { %307 = vst.msk [vmem:[%s207_s8 + $0x4] sm:$0xf] %vm305_vm1, %v298_v29 }
  0xa6   : > { %v288_v30 = vpop.f32.mrf.mxu2 }
  0xa7   : > { %v302_v31 = vpack.c.bf16 %v288_v30, %v288_v30  ;;  %510 = vmatmul.msk.f32.gmra.mxu3 %vm231_vm0, %v288_v30 }
  0xa8   : > { %v279_v32 = vpop.f32.mrf.mxu0 }
  0xa9   : > { %311 = vst.msk [vmem:[%s207_s8 + $0x14] sm:$0xf] %vm305_vm1, %v302_v31  ;;  %v299_v33 = vpack.c.bf16 %v279_v32, %v279_v32  ;;  %507 = vmatmul.msk.f32.gmra.mxu1 %vm231_vm0, %v279_v32 }
  0xab   : > { %308 = vst.msk [vmem:[%s207_s8 + $0x8] sm:$0xf] %vm305_vm1, %v299_v33 }
  0xae   : > { %v291_v34 = vpop.f32.mrf.mxu2 }
  0xaf   : > { %v303_v35 = vpack.c.bf16 %v291_v34, %v291_v34  ;;  %511 = vmatmul.msk.f32.gmra.mxu3 %vm231_vm0, %v291_v34 }
  0xb0   : > { %v282_v36 = vpop.f32.mrf.mxu0 }
  0xb1   : > { %312 = vst.msk [vmem:[%s207_s8 + $0x18] sm:$0xf] %vm305_vm1, %v303_v35  ;;  %v300_v37 = vpack.c.bf16 %v282_v36, %v282_v36  ;;  %508 = vmatmul.msk.f32.gmra.mxu1 %vm231_vm0, %v282_v36 }
  0xb3   : > { %309 = vst.msk [vmem:[%s207_s8 + $0xc] sm:$0xf] %vm305_vm1, %v300_v37 }
  0xb6   : > { %v294_v38 = vpop.f32.mrf.mxu2 }
  0xb7   : > { %v304_v39 = vpack.c.bf16 %v294_v38, %v294_v38  ;;  %512 = vmatmul.msk.f32.gmra.mxu3 %vm231_vm0, %v294_v38 }
  0xb9   : > { %313 = vst.msk [vmem:[%s207_s8 + $0x1c] sm:$0xf] %vm305_vm1, %v304_v39 }
 0x116   : > { %v363_v40 = vpop.f32.mrf.mxu1 }
 0x117   : > { %388 = vst.msk [vmem:[%s213_s11] sm:$0xff] %vm387_vm2, %v363_v40 }
 0x11e   : > { %v366_v41 = vpop.f32.mrf.mxu1 }
 0x11f   : > { %389 = vst.msk [vmem:[%s213_s11 + $0x8] sm:$0xff] %vm387_vm2, %v366_v41 }
 0x122   : > { %v375_v42 = vpop.f32.mrf.mxu3 }
 0x123   : > { %392 = vst.msk [vmem:[%s213_s11 + $0x20] sm:$0xff] %vm387_vm2, %v375_v42 }
 0x126   : > { %v369_v43 = vpop.f32.mrf.mxu1 }
 0x127   : > { %390 = vst.msk [vmem:[%s213_s11 + $0x10] sm:$0xff] %vm387_vm2, %v369_v43 }
 0x12a   : > { %v378_v44 = vpop.f32.mrf.mxu3 }
 0x12b   : > { %393 = vst.msk [vmem:[%s213_s11 + $0x28] sm:$0xff] %vm387_vm2, %v378_v44 }
 0x12e   : > { %v372_v45 = vpop.f32.mrf.mxu1 }
 0x12f   : > { %391 = vst.msk [vmem:[%s213_s11 + $0x18] sm:$0xff] %vm387_vm2, %v372_v45 }
 0x132   : > { %v381_v46 = vpop.f32.mrf.mxu3 }
 0x133   : > { %394 = vst.msk [vmem:[%s213_s11 + $0x30] sm:$0xff] %vm387_vm2, %v381_v46 }
 0x13a   : > { %v384_v47 = vpop.f32.mrf.mxu3 }
 0x13b   : > { %395 = vst.msk [vmem:[%s213_s11 + $0x38] sm:$0xff] %vm387_vm2, %v384_v47 }
 0x13c PF: > { %s15_s15 = sadd.s32 1, %s545_s15  }
 0x13d   : > { %p12_p4 = scmp.ge.s32.totalorder %s15_s15, 4  }
 0x13f   :  { %14 = sbr.rel (!%p12_p4) target bundleno = 1 (0x1), region = 74 }

</bundles_post_ra>
